<compile_context>
chip_gen: v6e
topology: v6e:2x2x1
jax: 0.10.0
libtpu: 0.0.40
codegen_flags: <defaults>
</compile_context>

<pallas_src>
import functools
from typing import List

import jax
import jax.numpy as jnp
from jax.experimental import pallas as pl
from jax.experimental.pallas import tpu as pltpu

LANE = 128
SUBLANE_BF16 = 16  # bf16 packs 16 rows per vreg


def _round_up(x: int, m: int) -> int:
    return (x + m - 1) // m * m


def _cdiv(a: int, b: int) -> int:
    return -(-a // b)


def _tpu_generation() -> int:
    """Best-effort TPU generation from device_kind ('TPU v5e' -> 5, ...)."""
    try:
        kind = jax.devices()[0].device_kind.lower()
    except Exception:
        return 6
    for g in (7, 6, 5, 4, 3, 2):
        if f"v{g}" in kind or f"tpu{g}" in kind:
            return g
    return 6


# --------------------------------------------------------------------------
# Fused MLP kernel: one grid step = one batch tile pushed through all layers.
# refs = (w0, b0, w1, b1, ..., o_ref); weights bf16 (D_in, D_out), biases f32.
# --------------------------------------------------------------------------
def _fused_mlp_kernel(x_ref, *refs, n_layers: int, use_sigmoid: bool,
                      bf16_epilogue: bool):
    o_ref = refs[-1]
    wb = refs[:-1]

    h = x_ref[...]  # bf16 (TB, D_in_pad)
    for li in range(n_layers):
        w = wb[2 * li][...]        # bf16 (D_in_l, D_out_l)
        b = wb[2 * li + 1][...]    # f32  (1, D_out_l)
        y = jnp.dot(h, w, preferred_element_type=jnp.float32) + b
        if li < n_layers - 1:
            # ReLU; Dropout(p=0.0) is identity.
            if bf16_epilogue:
                # v6e/v7x: bf16 VALU -> halve epilogue VALU work / vreg pressure.
                h = jnp.maximum(y.astype(jnp.bfloat16), 0.0)
            else:
                # v5e: no bf16 VALU; keep ReLU in f32, cast for the next MXU pass.
                h = jnp.maximum(y, 0.0).astype(jnp.bfloat16)
        else:
            if use_sigmoid:
                y = jax.nn.sigmoid(y)
            o_ref[...] = y.astype(o_ref.dtype)


# --------------------------------------------------------------------------
# Parameters
# --------------------------------------------------------------------------
def init_simple_mlp_params(key, in_channels: int, hidden_channels: List[int]):
    """PyTorch-style params: per layer W (out, in) f32, b (out,) f32."""
    params = []
    in_dim = in_channels
    for hidden_dim in hidden_channels:
        key, kw, kb = jax.random.split(key, 3)
        bound = 1.0 / jnp.sqrt(in_dim)
        w = jax.random.uniform(kw, (hidden_dim, in_dim), jnp.float32,
                               minval=-bound, maxval=bound)
        b = jax.random.uniform(kb, (hidden_dim,), jnp.float32,
                               minval=-bound, maxval=bound)
        params.append((w, b))
        in_dim = hidden_dim
    return params


def prepare_simple_mlp_params(params):
    """One-time transform: W -> W.T (in, out), zero-pad feature dims to
    multiples of 128 (lane-dense), weights cast to bf16, biases kept f32."""
    prepared = []
    for w, b in params:
        out_dim, in_dim = w.shape
        in_pad = _round_up(in_dim, LANE)
        out_pad = _round_up(out_dim, LANE)
        w_t = jnp.zeros((in_pad, out_pad), jnp.float32)
        w_t = w_t.at[:in_dim, :out_dim].set(w.T)
        b_p = jnp.zeros((1, out_pad), jnp.float32)
        b_p = b_p.at[0, :out_dim].set(b)
        prepared.append((w_t.astype(jnp.bfloat16), b_p))
    return prepared


# --------------------------------------------------------------------------
# Forward
# --------------------------------------------------------------------------
def simple_mlp_forward(x, prepared_params, out_dim: int,
                       use_sigmoid: bool = False,
                       out_dtype=jnp.float32):
    """Pallas simpleMLP.forward. `prepared_params` from prepare_simple_mlp_params."""
    gen = _tpu_generation()

    B = x.shape[0]
    x2 = x.reshape(B, -1)                      # x.view(x.size(0), -1), NCHW order
    D_in = x2.shape[1]
    D_in_pad = prepared_params[0][0].shape[0]
    D_out_pad = prepared_params[-1][0].shape[1]
    n_layers = len(prepared_params)
    out_itemsize = jnp.dtype(out_dtype).itemsize
    assert D_in <= D_in_pad, "input feature dim larger than prepared weights"

    # --- generation-aware VMEM budget ------------------------------------
    # v7x: 64 MiB physical VMEM per TC -> cap ~48 MiB; v5e/v6e: 128 MiB -> ~100 MiB.
    vmem_cap = (48 if gen >= 7 else 100) * 1024 * 1024
    headroom = 4 * 1024 * 1024

    weight_bytes = sum(int(w.size) * w.dtype.itemsize + int(b.size) * b.dtype.itemsize
                       for w, b in prepared_params)
    max_mid_pad = max((w.shape[1] for w, _ in prepared_params[:-1]), default=0)

    # Only x / out tiles (and intermediates) scale with TB; weights are resident.
    per_row_bytes = (2 * D_in_pad * 2                 # double-buffered bf16 x tile
                     + 2 * D_out_pad * out_itemsize   # double-buffered out tile
                     + 2 * max_mid_pad * 4)           # intermediate activations
    io_budget = max(vmem_cap - weight_bytes - headroom, 2 * 1024 * 1024)
    TB_max = min(1024, max(SUBLANE_BF16,
                           (io_budget // max(per_row_bytes, 1))
                           // SUBLANE_BF16 * SUBLANE_BF16))

    # --- batch tile selection: avoid padding blowup ----------------------
    if B <= TB_max:
        n_tiles = 1
        TB = _round_up(B, SUBLANE_BF16)
    else:
        n_tiles = _cdiv(B, TB_max)
        TB = _round_up(_cdiv(B, n_tiles), SUBLANE_BF16)
    # v7x has 2 TensorCores: make sure the "parallel" axis has >= 2 steps.
    if gen >= 7 and n_tiles == 1 and B >= 2 * SUBLANE_BF16:
        n_tiles = 2
        TB = _round_up(_cdiv(B, 2), SUBLANE_BF16)
    B_pad = n_tiles * TB

    # --- input: cast to bf16, pad only when actually needed --------------
    x_bf = x2.astype(jnp.bfloat16)
    pad_b, pad_d = B_pad - B, D_in_pad - D_in
    x_p = jnp.pad(x_bf, ((0, pad_b), (0, pad_d))) if (pad_b or pad_d) else x_bf

    flat_wb = []
    flops = 0
    bytes_accessed = int(x_p.size) * 2 + B_pad * D_out_pad * out_itemsize
    for w_t, b_p in prepared_params:
        di, do = w_t.shape
        flat_wb += [w_t, b_p]
        flops += 2 * B_pad * di * do
        bytes_accessed += int(w_t.size) * 2 + int(b_p.size) * 4

    kernel = functools.partial(
        _fused_mlp_kernel, n_layers=n_layers, use_sigmoid=use_sigmoid,
        bf16_epilogue=(gen >= 6),
    )
    cost = pl.CostEstimate(
        flops=int(flops),
        transcendentals=int(B_pad * D_out_pad) if use_sigmoid else 0,
        bytes_accessed=int(bytes_accessed),
    )

    def _call(single_buffer_weights: bool):
        # Weights/biases: whole-array blocks, same block every grid step
        # -> resident in VMEM across the batch loop. With constant index_map
        # they only need ONE buffer (the default pipeliner allocates 2).
        in_specs = [pl.BlockSpec((TB, D_in_pad), lambda i: (i, 0))]
        for w_t, b_p in prepared_params:
            di, do = w_t.shape
            if single_buffer_weights:
                in_specs.append(pl.BlockSpec((di, do), lambda i: (0, 0),
                                             pipeline_mode=pl.Buffered(1)))
                in_specs.append(pl.BlockSpec((1, do), lambda i: (0, 0),
                                             pipeline_mode=pl.Buffered(1)))
            else:
                in_specs.append(pl.BlockSpec((di, do), lambda i: (0, 0)))
                in_specs.append(pl.BlockSpec((1, do), lambda i: (0, 0)))

        wbuf = 1 if single_buffer_weights else 2
        need = (wbuf * weight_bytes
                + 2 * TB * D_in_pad * 2
                + 2 * TB * D_out_pad * out_itemsize
                + 2 * TB * max_mid_pad * 4
                + headroom)
        vmem_limit = int(min(max(need, 16 * 1024 * 1024), vmem_cap))

        return pl.pallas_call(
            kernel,
            out_shape=jax.ShapeDtypeStruct((B_pad, D_out_pad), out_dtype),
            grid=(n_tiles,),
            in_specs=in_specs,
            out_specs=pl.BlockSpec((TB, D_out_pad), lambda i: (i, 0)),
            compiler_params=pltpu.CompilerParams(
                dimension_semantics=("parallel",),
                vmem_limit_bytes=vmem_limit,
            ),
            cost_estimate=cost,
        )(x_p, *flat_wb)

    try:
        out_pad = _call(single_buffer_weights=True)
    except Exception:
        # Some jax versions reject Buffered(1) on the top-level grid; default
        # double-buffering is functionally identical (just more VMEM).
        out_pad = _call(single_buffer_weights=False)

    # Slice away batch / lane padding. (Note: with use_sigmoid the padded
    # lanes hold 0.5 before slicing — harmless, they are discarded here.)
    return out_pad[:B, :out_dim]


# --------------------------------------------------------------------------
# Pure-JAX reference (mirrors the bf16-matmul / f32-accumulate numerics).
# --------------------------------------------------------------------------
def simple_mlp_reference(x, params, use_sigmoid: bool = False):
    B = x.shape[0]
    h = x.reshape(B, -1)
    n_layers = len(params)
    for li, (w, b) in enumerate(params):
        y = jnp.dot(h.astype(jnp.bfloat16), w.T.astype(jnp.bfloat16),
                    preferred_element_type=jnp.float32) + b
        if li != n_layers - 1:
            y = jnp.maximum(y, 0.0)
        h = y
    if use_sigmoid:
        h = jax.nn.sigmoid(h)
    return h


if __name__ == "__main__":
    key = jax.random.PRNGKey(0)
    kx, kp = jax.random.split(key)

    # Small image-like input: B=2, C=4, H=W=16 -> flattened feature dim 1024.
    B, C, H, W = 2, 4, 16, 16
    x = jax.random.normal(kx, (B, C, H, W), jnp.float32)

    in_channels = C * H * W
    hidden_channels = [128, 32]  # Linear(1024->128)+ReLU, Linear(128->32)
    params = init_simple_mlp_params(kp, in_channels, hidden_channels)
    prepared = prepare_simple_mlp_params(params)

    out = simple_mlp_forward(x, prepared, out_dim=hidden_channels[-1],
                             use_sigmoid=False)
    out = jax.block_until_ready(out)

    ref = simple_mlp_reference(x, params, use_sigmoid=False)
    assert out.shape == (B, hidden_channels[-1])
    assert jnp.allclose(out, ref, atol=1e-2, rtol=1e-2), "mismatch vs reference"

    print("KERNEL_OK")
</pallas_src>

<mosaic_0001>
module attributes {stable_mosaic.version = 11 : i64} {
  func.func @_fused_mlp_kernel(%arg0: i32, %arg1: memref<16x1024xbf16, #tpu.memory_space<vmem>>, %arg2: memref<1024x128xbf16, #tpu.memory_space<vmem>>, %arg3: memref<1x128xf32, #tpu.memory_space<vmem>>, %arg4: memref<128x128xbf16, #tpu.memory_space<vmem>>, %arg5: memref<1x128xf32, #tpu.memory_space<vmem>>, %arg6: memref<16x128xf32, #tpu.memory_space<vmem>>) attributes {dimension_semantics = [#tpu.dimension_semantics<parallel>], iteration_bounds = array<i64: 1>, scalar_prefetch = 0 : i64, scratch_operands = 0 : i64, tpu.core_type = #tpu.core_type<tc>, window_params = [{transform_indices = @transform_0, window_bounds = array<i64: 16, 1024>}, {pipeline_mode = #tpu.pipeline_mode<synchronous>, transform_indices = @transform_1, window_bounds = array<i64: 1024, 128>}, {pipeline_mode = #tpu.pipeline_mode<synchronous>, transform_indices = @transform_2, window_bounds = array<i64: 1, 128>}, {pipeline_mode = #tpu.pipeline_mode<synchronous>, transform_indices = @transform_3, window_bounds = array<i64: 128, 128>}, {pipeline_mode = #tpu.pipeline_mode<synchronous>, transform_indices = @transform_4, window_bounds = array<i64: 1, 128>}, {transform_indices = @transform_5, window_bounds = array<i64: 16, 128>}]} {
    %c0 = arith.constant 0 : index
    %c0_0 = arith.constant 0 : index
    %0 = vector.load %arg1[%c0, %c0_0] : memref<16x1024xbf16, #tpu.memory_space<vmem>>, vector<16x1024xbf16>
    %c0_1 = arith.constant 0 : index
    %c0_2 = arith.constant 0 : index
    %1 = vector.load %arg2[%c0_1, %c0_2] : memref<1024x128xbf16, #tpu.memory_space<vmem>>, vector<1024x128xbf16>
    %c0_3 = arith.constant 0 : index
    %c0_4 = arith.constant 0 : index
    %2 = vector.load %arg3[%c0_3, %c0_4] : memref<1x128xf32, #tpu.memory_space<vmem>>, vector<1x128xf32>
    %cst = arith.constant dense<0.000000e+00> : vector<16x128xf32>
    %3 = tpu.matmul %0, %1, %cst {dimension_numbers = #tpu.dot_dimension_numbers<[1], [0], [0], [1], [0, 0, 1, 1], [], []>} : vector<16x1024xbf16>, vector<1024x128xbf16>, vector<16x128xf32> -> vector<16x128xf32>
    %4 = vector.broadcast %2 : vector<1x128xf32> to vector<16x128xf32>
    %5 = arith.addf %3, %4 : vector<16x128xf32>
    %6 = arith.truncf %5 : vector<16x128xf32> to vector<16x128xbf16>
    %cst_5 = arith.constant 0.000000e+00 : bf16
    %7 = vector.broadcast %cst_5 : bf16 to vector<16x128xbf16>
    %8 = arith.maximumf %6, %7 : vector<16x128xbf16>
    %c0_6 = arith.constant 0 : index
    %c0_7 = arith.constant 0 : index
    %9 = vector.load %arg4[%c0_6, %c0_7] : memref<128x128xbf16, #tpu.memory_space<vmem>>, vector<128x128xbf16>
    %c0_8 = arith.constant 0 : index
    %c0_9 = arith.constant 0 : index
    %10 = vector.load %arg5[%c0_8, %c0_9] : memref<1x128xf32, #tpu.memory_space<vmem>>, vector<1x128xf32>
    %cst_10 = arith.constant dense<0.000000e+00> : vector<16x128xf32>
    %11 = tpu.matmul %8, %9, %cst_10 {dimension_numbers = #tpu.dot_dimension_numbers<[1], [0], [0], [1], [0, 0, 1, 1], [], []>} : vector<16x128xbf16>, vector<128x128xbf16>, vector<16x128xf32> -> vector<16x128xf32>
    %12 = vector.broadcast %10 : vector<1x128xf32> to vector<16x128xf32>
    %13 = arith.addf %11, %12 : vector<16x128xf32>
    %c0_11 = arith.constant 0 : index
    %c0_12 = arith.constant 0 : index
    %14 = vector.load %arg6[%c0_11, %c0_12] : memref<16x128xf32, #tpu.memory_space<vmem>>, vector<16x128xf32>
    tpu.vector_store %arg6[%c0_11, %c0_12], %13 {strides = array<i32>} : memref<16x128xf32, #tpu.memory_space<vmem>>, vector<16x128xf32>,
    return
  }
  func.func @transform_0(%arg0: i32) -> (i32, i32) {
    %c0_i32 = arith.constant 0 : i32
    %c0_i32_0 = arith.constant 0 : i32
    return %arg0, %c0_i32 : i32, i32
  }
  func.func @transform_1(%arg0: i32) -> (i32, i32) {
    %c0_i32 = arith.constant 0 : i32
    %c0_i32_0 = arith.constant 0 : i32
    %c0_i32_1 = arith.constant 0 : i32
    return %c0_i32, %c0_i32_0 : i32, i32
  }
  func.func @transform_2(%arg0: i32) -> (i32, i32) {
    %c0_i32 = arith.constant 0 : i32
    %c0_i32_0 = arith.constant 0 : i32
    %c0_i32_1 = arith.constant 0 : i32
    return %c0_i32, %c0_i32_0 : i32, i32
  }
  func.func @transform_3(%arg0: i32) -> (i32, i32) {
    %c0_i32 = arith.constant 0 : i32
    %c0_i32_0 = arith.constant 0 : i32
    %c0_i32_1 = arith.constant 0 : i32
    return %c0_i32, %c0_i32_0 : i32, i32
  }
  func.func @transform_4(%arg0: i32) -> (i32, i32) {
    %c0_i32 = arith.constant 0 : i32
    %c0_i32_0 = arith.constant 0 : i32
    %c0_i32_1 = arith.constant 0 : i32
    return %c0_i32, %c0_i32_0 : i32, i32
  }
  func.func @transform_5(%arg0: i32) -> (i32, i32) {
    %c0_i32 = arith.constant 0 : i32
    %c0_i32_0 = arith.constant 0 : i32
    return %arg0, %c0_i32 : i32, i32
  }
}

module attributes {stable_mosaic.version = 11 : i64} {
  func.func @_fused_mlp_kernel(%arg0: i32, %arg1: memref<16x1024xbf16, #tpu.memory_space<vmem>>, %arg2: memref<1024x128xbf16, #tpu.memory_space<vmem>>, %arg3: memref<1x128xf32, #tpu.memory_space<vmem>>, %arg4: memref<128x128xbf16, #tpu.memory_space<vmem>>, %arg5: memref<1x128xf32, #tpu.memory_space<vmem>>, %arg6: memref<16x128xf32, #tpu.memory_space<vmem>>) attributes {dimension_semantics = [#tpu.dimension_semantics<parallel>], iteration_bounds = array<i64: 1>, scalar_prefetch = 0 : i64, scratch_operands = 0 : i64, tpu.core_type = #tpu.core_type<tc>, window_params = [{transform_indices = @transform_0, window_bounds = array<i64: 16, 1024>}, {pipeline_mode = #tpu.pipeline_mode<synchronous>, transform_indices = @transform_1, window_bounds = array<i64: 1024, 128>}, {pipeline_mode = #tpu.pipeline_mode<synchronous>, transform_indices = @transform_2, window_bounds = array<i64: 1, 128>}, {pipeline_mode = #tpu.pipeline_mode<synchronous>, transform_indices = @transform_3, window_bounds = array<i64: 128, 128>}, {pipeline_mode = #tpu.pipeline_mode<synchronous>, transform_indices = @transform_4, window_bounds = array<i64: 1, 128>}, {transform_indices = @transform_5, window_bounds = array<i64: 16, 128>}]} {
    %c0 = arith.constant 0 : index
    %c0_0 = arith.constant 0 : index
    %0 = vector.load %arg1[%c0, %c0_0] : memref<16x1024xbf16, #tpu.memory_space<vmem>>, vector<16x1024xbf16>
    %c0_1 = arith.constant 0 : index
    %c0_2 = arith.constant 0 : index
    %1 = vector.load %arg2[%c0_1, %c0_2] : memref<1024x128xbf16, #tpu.memory_space<vmem>>, vector<1024x128xbf16>
    %c0_3 = arith.constant 0 : index
    %c0_4 = arith.constant 0 : index
    %2 = vector.load %arg3[%c0_3, %c0_4] : memref<1x128xf32, #tpu.memory_space<vmem>>, vector<1x128xf32>
    %cst = arith.constant dense<0.000000e+00> : vector<16x128xf32>
    %3 = tpu.matmul %0, %1, %cst {dimension_numbers = #tpu.dot_dimension_numbers<[1], [0], [0], [1], [0, 0, 1, 1], [], []>} : vector<16x1024xbf16>, vector<1024x128xbf16>, vector<16x128xf32> -> vector<16x128xf32>
    %4 = vector.broadcast %2 : vector<1x128xf32> to vector<16x128xf32>
    %5 = arith.addf %3, %4 : vector<16x128xf32>
    %6 = arith.truncf %5 : vector<16x128xf32> to vector<16x128xbf16>
    %cst_5 = arith.constant 0.000000e+00 : bf16
    %7 = vector.broadcast %cst_5 : bf16 to vector<16x128xbf16>
    %8 = arith.maximumf %6, %7 : vector<16x128xbf16>
    %c0_6 = arith.constant 0 : index
    %c0_7 = arith.constant 0 : index
    %9 = vector.load %arg4[%c0_6, %c0_7] : memref<128x128xbf16, #tpu.memory_space<vmem>>, vector<128x128xbf16>
    %c0_8 = arith.constant 0 : index
    %c0_9 = arith.constant 0 : index
    %10 = vector.load %arg5[%c0_8, %c0_9] : memref<1x128xf32, #tpu.memory_space<vmem>>, vector<1x128xf32>
    %cst_10 = arith.constant dense<0.000000e+00> : vector<16x128xf32>
    %11 = tpu.matmul %8, %9, %cst_10 {dimension_numbers = #tpu.dot_dimension_numbers<[1], [0], [0], [1], [0, 0, 1, 1], [], []>} : vector<16x128xbf16>, vector<128x128xbf16>, vector<16x128xf32> -> vector<16x128xf32>
    %12 = vector.broadcast %10 : vector<1x128xf32> to vector<16x128xf32>
    %13 = arith.addf %11, %12 : vector<16x128xf32>
    %c0_11 = arith.constant 0 : index
    %c0_12 = arith.constant 0 : index
    %14 = vector.load %arg6[%c0_11, %c0_12] : memref<16x128xf32, #tpu.memory_space<vmem>>, vector<16x128xf32>
    tpu.vector_store %arg6[%c0_11, %c0_12], %13 {strides = array<i32>} : memref<16x128xf32, #tpu.memory_space<vmem>>, vector<16x128xf32>,
    return
  }
  func.func @transform_0(%arg0: i32) -> (i32, i32) {
    %c0_i32 = arith.constant 0 : i32
    %c0_i32_0 = arith.constant 0 : i32
    return %arg0, %c0_i32 : i32, i32
  }
  func.func @transform_1(%arg0: i32) -> (i32, i32) {
    %c0_i32 = arith.constant 0 : i32
    %c0_i32_0 = arith.constant 0 : i32
    %c0_i32_1 = arith.constant 0 : i32
    return %c0_i32, %c0_i32_0 : i32, i32
  }
  func.func @transform_2(%arg0: i32) -> (i32, i32) {
    %c0_i32 = arith.constant 0 : i32
    %c0_i32_0 = arith.constant 0 : i32
    %c0_i32_1 = arith.constant 0 : i32
    return %c0_i32, %c0_i32_0 : i32, i32
  }
  func.func @transform_3(%arg0: i32) -> (i32, i32) {
    %c0_i32 = arith.constant 0 : i32
    %c0_i32_0 = arith.constant 0 : i32
    %c0_i32_1 = arith.constant 0 : i32
    return %c0_i32, %c0_i32_0 : i32, i32
  }
  func.func @transform_4(%arg0: i32) -> (i32, i32) {
    %c0_i32 = arith.constant 0 : i32
    %c0_i32_0 = arith.constant 0 : i32
    %c0_i32_1 = arith.constant 0 : i32
    return %c0_i32, %c0_i32_0 : i32, i32
  }
  func.func @transform_5(%arg0: i32) -> (i32, i32) {
    %c0_i32 = arith.constant 0 : i32
    %c0_i32_0 = arith.constant 0 : i32
    return %arg0, %c0_i32 : i32, i32
  }
}

</mosaic_0001>

<bundles_post_ra>
// kernel: tpu_custom_call.1
= control target key start
LH: loop header
LB: loop body
LE: loop exit
PB: predicated region body
PF: predicated region fallthrough
CT: control target
= control target key end

     0   :  { %10 = vsyncpa [#allocation3], 0  ;;  %s1359_s0 = inlined_call_operand.hbm [shape: bf16[16,1024], index: 0, kind: input, shape index: {}]   ;;  %s1360_s1 = inlined_call_operand.hbm [shape: bf16[1024,128], index: 1, kind: input, shape index: {}]   ;;  %s1361_s2 = inlined_call_operand.vmem [shape: f32[1,128], index: 2, kind: input, shape index: {}]   ;;  %s1362_s3 = inlined_call_operand.hbm [shape: bf16[128,128], index: 3, kind: input, shape index: {}]   ;;  %s1363_s4 = inlined_call_operand.vmem [shape: f32[1,128], index: 4, kind: input, shape index: {}]   ;;  %s1364_s5 = inlined_call_operand.hbm [shape: f32[16,128], index: 5, kind: output, shape index: {}]  }
   0x1   :  { %11 = vsyncpa [#allocation6], 0 }
   0x2   :  { %12 = vsyncpa [#allocation4], 0  ;;  %s1298_s18 = smov [#allocation5]  }
   0x3   :  { %s30_s19 = sshll.u32 %s1298_s18, 4  ;;  %s31_s19 = int_to_ptr.vmem [resolvable:$true] %s30_s19 }
   0x4   :  { %s1220_s20 = scalar_lea.vmem %s31_s19, 8192  ;;  %p1225_p1 = scmp.lt.s32.totalorder %s31_s19, %s31_s19 }
   0x5   :  { %p1221_p0 = scmp.ne.s32.totalorder %s31_s19, %s1220_s20  ;;  %p1226_p2 = scmp.lt.s32.totalorder %s1220_s20, %s1220_s20 }
   0x7   :  { %p1227_p3 = por %p1226_p2, %p1225_p1 }
   0x9   :  { %p1228_p4 = pnand %p1227_p3, %p1221_p0 }
   0xb   :  { %1231 = shalt.err (!%p1228_p4)
}
   0xc   :  { %s1299_s21 = smov 64   ;;  %s1300_s22 = smov 4  }
   0xd   :  { %36 = dma.hbm_to_vmem [thread:$0]  %s1360_s1, 8192, %s31_s19, [#allocation6], %s1299_s21, %s1299_s21, %s1300_s22  }
   0xe   :  { %s1301_s25 = smov [#allocation2]  }
   0xf   :  { %s18_s26 = sshll.u32 %s1301_s25, 4  ;;  %s19_s26 = int_to_ptr.vmem [resolvable:$true] %s18_s26 }
  0x10   :  { %s1240_s27 = scalar_lea.vmem %s19_s26, 1024  ;;  %p1245_p6 = scmp.lt.s32.totalorder %s19_s26, %s19_s26 }
  0x11   :  { %p1241_p5 = scmp.ne.s32.totalorder %s19_s26, %s1240_s27  ;;  %p1246_p7 = scmp.lt.s32.totalorder %s1240_s27, %s1240_s27 }
  0x13   :  { %p1247_p8 = por %p1246_p7, %p1245_p6 }
  0x15   :  { %p1248_p9 = pnand %p1247_p8, %p1241_p5 }
  0x17   :  { %1251 = shalt.err (!%p1248_p9)
}
  0x18   :  { %s1302_s28 = smov 512   ;;  %s1303_s29 = smov 32  }
  0x19   :  { %24 = dma.hbm_to_vmem [thread:$0]  %s1359_s0, 1024, %s19_s26, [#allocation3], %s1302_s28, %s1302_s28, %s1303_s29  }
  0x1a   :  { %s1304_s7 = smov [#allocation7]  }
  0x1b   :  { %s44_s8 = sshll.u32 %s1304_s7, 4  ;;  %s45_s8 = int_to_ptr.vmem [resolvable:$true] %s44_s8 }
  0x1c   :  { %s1260_s1 = scalar_lea.vmem %s45_s8, 1024  ;;  %p1265_p11 = scmp.lt.s32.totalorder %s45_s8, %s45_s8 }
  0x1d   :  { %p1261_p10 = scmp.ne.s32.totalorder %s45_s8, %s1260_s1  ;;  %p1266_p12 = scmp.lt.s32.totalorder %s1260_s1, %s1260_s1 }
  0x1f   :  { %p1267_p13 = por %p1266_p12, %p1265_p11 }
  0x21   :  { %p1268_p0 = pnand %p1267_p13, %p1261_p10 }
  0x23   :  { %1271 = shalt.err (!%p1268_p0)
}
  0x24   :  { %50 = dma.hbm_to_vmem [thread:$0]  %s1362_s3, 1024, %s45_s8, [#allocation6], %s1299_s21, %s1299_s21, %s1300_s22  }
  0x25   :  { %1292 = dma.done.wait [#allocation3], 1024  }
  0x26   :  { %1293 = vsyncadd [#allocation3], 4294966272 }
  0x27   :  { %1294 = dma.done.wait [#allocation6], 9216  }
  0x28   :  { %1295 = vsyncadd [#allocation6], 4294958080  ;;  %v1140_v0 = vld [vmem:[#allocation5 + $0x78] sm:$0xff]   ;;  %v1144_v4 = vld [vmem:[#allocation5 + $0x70] sm:$0xff]   ;;  %vm1306_vm0 = vmmov 0   ;;  %s1308_s12 = smov [#allocation8]  }
  0x29   :  { %v1141_v1 = vld [vmem:[#allocation5 + $0xf8] sm:$0xff]   ;;  %1010 = vmatprep.subr.bf16.mxu0 %v1140_v0  ;;  %v1145_v5 = vld [vmem:[#allocation5 + $0xf0] sm:$0xff]   ;;  %v1148_v8 = vld [vmem:[#allocation5 + $0x68] sm:$0xff]   ;;  %s915_s13 = sshll.u32 %s1308_s12, 4  ;;  %s916_s13 = int_to_ptr.vmem [resolvable:$true] %s915_s13 }
  0x2a   :  { %v1142_v2 = vld [vmem:[#allocation5 + $0x38] sm:$0xff]   ;;  %1032 = vmatprep.subr.bf16.mxu1 %v1141_v1  ;;  %v1146_v6 = vld [vmem:[#allocation5 + $0x30] sm:$0xff]   ;;  %v1149_v9 = vld [vmem:[#allocation5 + $0xe8] sm:$0xff]   ;;  %s1272_s14 = scalar_lea.vmem %s916_s13, 256  ;;  %p1277_p2 = scmp.lt.s32.totalorder %s916_s13, %s916_s13 }
  0x2b   :  { %v1143_v3 = vld [vmem:[#allocation5 + $0xb8] sm:$0xff]   ;;  %1011 = vmatpush3.bf16.msra.mxu0 %v1142_v2  ;;  %v1147_v7 = vld [vmem:[#allocation5 + $0xb0] sm:$0xff]   ;;  %v1150_v10 = vld [vmem:[#allocation5 + $0x28] sm:$0xff]   ;;  %p1273_p1 = scmp.ne.s32.totalorder %s916_s13, %s1272_s14  ;;  %p1278_p3 = scmp.lt.s32.totalorder %s1272_s14, %s1272_s14 }
  0x2c   :  { %1033 = vmatpush3.bf16.msra.mxu1 %v1143_v3  ;;  %1012 = vmatprep.subr.bf16.mxu0 %v1144_v4  ;;  %v1151_v11 = vld [vmem:[#allocation5 + $0xa8] sm:$0xff]   ;;  %v1152_v12 = vld [vmem:[#allocation5 + $0x60] sm:$0xff]   ;;  %v1156_v16 = vld [vmem:[#allocation5 + $0x58] sm:$0xff]  }
  0x2d   :  { %1034 = vmatprep.subr.bf16.mxu1 %v1145_v5  ;;  %v1153_v13 = vld [vmem:[#allocation5 + $0xe0] sm:$0xff]   ;;  %v1157_v17 = vld [vmem:[#allocation5 + $0xd8] sm:$0xff]   ;;  %v1160_v20 = vld [vmem:[#allocation5 + $0x50] sm:$0xff]   ;;  %p1279_p4 = por %p1278_p3, %p1277_p2 }
  0x2e   :  { %v1154_v14 = vld [vmem:[#allocation5 + $0x20] sm:$0xff]   ;;  %v1158_v18 = vld [vmem:[#allocation5 + $0x18] sm:$0xff]   ;;  %v1161_v21 = vld [vmem:[#allocation5 + $0xd0] sm:$0xff]  }
  0x2f   :  { %1013 = vmatpush3.bf16.msra.mxu0 %v1146_v6  ;;  %v1155_v15 = vld [vmem:[#allocation5 + $0xa0] sm:$0xff]   ;;  %v1159_v19 = vld [vmem:[#allocation5 + $0x98] sm:$0xff]   ;;  %v1162_v22 = vld [vmem:[#allocation5 + $0x10] sm:$0xff]   ;;  %p1280_p5 = pnand %p1279_p4, %p1273_p1 }
  0x30   :  { %1035 = vmatpush3.bf16.msra.mxu1 %v1147_v7  ;;  %1014 = vmatprep.subr.bf16.mxu0 %v1148_v8  ;;  %v1163_v23 = vld [vmem:[#allocation5 + $0x90] sm:$0xff]   ;;  %v1164_v24 = vld [vmem:[#allocation5 + $0x48] sm:$0xff]   ;;  %v1168_v28 = vld [vmem:[#allocation5 + $0x40] sm:$0xff]  }
  0x31   :  { %1036 = vmatprep.subr.bf16.mxu1 %v1149_v9  ;;  %v1165_v25 = vld [vmem:[#allocation5 + $0xc8] sm:$0xff]   ;;  %v1169_v29 = vld [vmem:[#allocation5 + $0xc0] sm:$0xff]   ;;  %v1172_v40 = vld [vmem:[#allocation5 + $0x178] sm:$0xff]  }
  0x32   :  { %v1166_v26 = vld [vmem:[#allocation5 + $0x8] sm:$0xff]   ;;  %v1170_v30 = vld [vmem:[#allocation5] sm:$0xff]   ;;  %v1173_v41 = vld [vmem:[#allocation5 + $0x1f8] sm:$0xff]  }
  0x33   :  { %1015 = vmatpush3.bf16.msra.mxu0 %v1150_v10  ;;  %v1167_v27 = vld [vmem:[#allocation5 + $0x88] sm:$0xff]   ;;  %v1171_v31 = vld [vmem:[#allocation5 + $0x80] sm:$0xff]   ;;  %v1174_v42 = vld [vmem:[#allocation5 + $0x138] sm:$0xff]  }
  0x34   :  { %1037 = vmatpush3.bf16.msra.mxu1 %v1151_v11  ;;  %1016 = vmatprep.subr.bf16.mxu0 %v1152_v12  ;;  %v63_v32 = vld [vmem:[#allocation2] sm:$0xff]  ;;  %v64_v34 = vld [vmem:[#allocation2 + $0x8] sm:$0xff]  ;;  %v1175_v43 = vld [vmem:[#allocation5 + $0x1b8] sm:$0xff]  }
  0x35   :  { %1038 = vmatprep.subr.bf16.mxu1 %v1153_v13  ;;  %v67_v33 = vld [vmem:[#allocation2 + $0x20] sm:$0xff]  ;;  %v68_v37 = vld [vmem:[#allocation2 + $0x28] sm:$0xff]  ;;  %v1176_v44 = vld [vmem:[#allocation5 + $0x170] sm:$0xff]  }
  0x36   :  { %v929_v35 = vcombine.low %v63_v32, %v67_v33  ;;  %v930_v36 = vcombine.high %v63_v32, %v67_v33  ;;  %v931_v38 = vcombine.low %v64_v34, %v68_v37  ;;  %v932_v39 = vcombine.high %v64_v34, %v68_v37  ;;  %v1177_v45 = vld [vmem:[#allocation5 + $0x1f0] sm:$0xff]   ;;  %v1180_v48 = vld [vmem:[#allocation5 + $0x168] sm:$0xff]   ;;  %v1184_v52 = vld [vmem:[#allocation5 + $0x160] sm:$0xff]  }
  0x37   :  { %1017 = vmatpush3.bf16.msra.mxu0 %v1154_v14  ;;  %v1178_v46 = vld [vmem:[#allocation5 + $0x130] sm:$0xff]   ;;  %v1181_v49 = vld [vmem:[#allocation5 + $0x1e8] sm:$0xff]   ;;  %v1185_v53 = vld [vmem:[#allocation5 + $0x1e0] sm:$0xff]  }
  0x38   :  { %1039 = vmatpush3.bf16.msra.mxu1 %v1155_v15  ;;  %1018 = vmatprep.subr.bf16.mxu0 %v1156_v16  ;;  %v1179_v47 = vld [vmem:[#allocation5 + $0x1b0] sm:$0xff]   ;;  %v1182_v50 = vld [vmem:[#allocation5 + $0x128] sm:$0xff]   ;;  %v1186_v54 = vld [vmem:[#allocation5 + $0x120] sm:$0xff]  }
  0x39   :  { %1040 = vmatprep.subr.bf16.mxu1 %v1157_v17  ;;  %662 = vmatprep.mubr.bf16.mxu0 %v930_v36  ;;  %v1183_v51 = vld [vmem:[#allocation5 + $0x1a8] sm:$0xff]   ;;  %v1187_v55 = vld [vmem:[#allocation5 + $0x1a0] sm:$0xff]   ;;  %v1188_v56 = vld [vmem:[#allocation5 + $0x158] sm:$0xff]   ;;  %v1305_v17 = vmov 0.0  }
  0x3a   :  { %703 = vmatprep.mubr.bf16.mxu1 %v932_v39  ;;  %v1189_v57 = vld [vmem:[#allocation5 + $0x1d8] sm:$0xff]   ;;  %v1192_v60 = vld [vmem:[#allocation5 + $0x150] sm:$0xff]   ;;  %v1196_v0 = vld [vmem:[#allocation5 + $0x148] sm:$0xff]  }
  0x3b   :  { %1019 = vmatpush3.bf16.msra.mxu0 %v1158_v18  ;;  %v1190_v58 = vld [vmem:[#allocation5 + $0x118] sm:$0xff]   ;;  %v1193_v61 = vld [vmem:[#allocation5 + $0x1d0] sm:$0xff]   ;;  %v1197_v1 = vld [vmem:[#allocation5 + $0x1c8] sm:$0xff]  }
  0x3c   :  { %1041 = vmatpush3.bf16.msra.mxu1 %v1159_v19  ;;  %1020 = vmatprep.subr.bf16.mxu0 %v1160_v20  ;;  %v1191_v59 = vld [vmem:[#allocation5 + $0x198] sm:$0xff]   ;;  %v1194_v62 = vld [vmem:[#allocation5 + $0x110] sm:$0xff]   ;;  %v1198_v2 = vld [vmem:[#allocation5 + $0x108] sm:$0xff]  }
  0x3d   :  { %1042 = vmatprep.subr.bf16.mxu1 %v1161_v21  ;;  %v1195_v63 = vld [vmem:[#allocation5 + $0x190] sm:$0xff]   ;;  %v1199_v3 = vld [vmem:[#allocation5 + $0x188] sm:$0xff]   ;;  %v1200_v4 = vld [vmem:[#allocation5 + $0x140] sm:$0xff]  }
  0x3e   :  { %v1201_v5 = vld [vmem:[#allocation5 + $0x1c0] sm:$0xff]   ;;  %v65_v8 = vld [vmem:[#allocation2 + $0x10] sm:$0xff]  ;;  %v66_v12 = vld [vmem:[#allocation2 + $0x18] sm:$0xff] }
  0x3f   :  { %1021 = vmatpush3.bf16.msra.mxu0 %v1162_v22  ;;  %v1202_v6 = vld [vmem:[#allocation5 + $0x100] sm:$0xff]   ;;  %v69_v9 = vld [vmem:[#allocation2 + $0x30] sm:$0xff]  ;;  %v70_v13 = vld [vmem:[#allocation2 + $0x38] sm:$0xff] }
  0x40   :  { %1043 = vmatpush3.bf16.msra.mxu1 %v1163_v23  ;;  %1022 = vmatprep.subr.bf16.mxu0 %v1164_v24  ;;  %v1203_v7 = vld [vmem:[#allocation5 + $0x180] sm:$0xff]   ;;  %v933_v10 = vcombine.low %v65_v8, %v69_v9  ;;  %v934_v11 = vcombine.high %v65_v8, %v69_v9  ;;  %v935_v14 = vcombine.low %v66_v12, %v70_v13  ;;  %v1204_v16 = vld [vmem:[#allocation7 + $0x38] sm:$0xff]   ;;  %v1205_v18 = vld [vmem:[#allocation7 + $0x30] sm:$0xff]  }
  0x41   :  { %1044 = vmatprep.subr.bf16.mxu1 %v1165_v25  ;;  %v936_v15 = vcombine.high %v66_v12, %v70_v13  ;;  %v1206_v19 = vld [vmem:[#allocation7 + $0x28] sm:$0xff]   ;;  %v1207_v20 = vld [vmem:[#allocation7 + $0x20] sm:$0xff]   ;;  %v1208_v21 = vld [vmem:[#allocation7 + $0x18] sm:$0xff]  }
  0x42   :  { %v1209_v22 = vld [vmem:[#allocation7 + $0x10] sm:$0xff]   ;;  %v1210_v23 = vld [vmem:[#allocation7 + $0x8] sm:$0xff]   ;;  %v1211_v24 = vld [vmem:[#allocation7] sm:$0xff]  }
  0x43   :  { %1023 = vmatpush3.bf16.msra.mxu0 %v1166_v26  ;;  %v928_v33 = vld [vmem:[%s1361_s2] ss:$0 sm:$0xff] }
  0x44   :  { %1045 = vmatpush3.bf16.msra.mxu1 %v1167_v27  ;;  %1024 = vmatprep.subr.bf16.mxu0 %v1168_v28 }
  0x45   :  { %1046 = vmatprep.subr.bf16.mxu1 %v1169_v29 }
  0x47   :  { %1025 = vmatpush3.bf16.msra.mxu0 %v1170_v30 }
  0x48   :  { %1047 = vmatpush3.bf16.msra.mxu1 %v1171_v31  ;;  %1054 = vmatprep.subr.bf16.mxu0 %v1172_v40 }
  0x49   :  { %1076 = vmatprep.subr.bf16.mxu1 %v1173_v41 }
  0x4a   :  { %663 = vmatmul.mubr.bf16.vlgmr.msra.gmra.mxu0 %v929_v35 }
  0x4b   :  { %704 = vmatmul.mubr.bf16.vlgmr.msra.gmra.mxu1 %v931_v38  ;;  %1055 = vmatpush3.bf16.msra.mxu0 %v1174_v42 }
  0x4c   :  { %1077 = vmatpush3.bf16.msra.mxu1 %v1175_v43  ;;  %1056 = vmatprep.subr.bf16.mxu0 %v1176_v44 }
  0x4d   :  { %1078 = vmatprep.subr.bf16.mxu1 %v1177_v45  ;;  %744 = vmatprep.mubr.bf16.mxu0 %v934_v11 }
  0x4e   :  { %785 = vmatprep.mubr.bf16.mxu1 %v936_v15 }
  0x4f   :  { %1057 = vmatpush3.bf16.msra.mxu0 %v1178_v46 }
  0x50   :  { %1079 = vmatpush3.bf16.msra.mxu1 %v1179_v47  ;;  %1058 = vmatprep.subr.bf16.mxu0 %v1180_v48 }
  0x51   :  { %1080 = vmatprep.subr.bf16.mxu1 %v1181_v49 }
  0x53   :  { %1059 = vmatpush3.bf16.msra.mxu0 %v1182_v50 }
  0x54   :  { %1081 = vmatpush3.bf16.msra.mxu1 %v1183_v51  ;;  %1060 = vmatprep.subr.bf16.mxu0 %v1184_v52 }
  0x55   :  { %1082 = vmatprep.subr.bf16.mxu1 %v1185_v53 }
  0x57   :  { %1061 = vmatpush3.bf16.msra.mxu0 %v1186_v54 }
  0x58   :  { %1083 = vmatpush3.bf16.msra.mxu1 %v1187_v55  ;;  %1062 = vmatprep.subr.bf16.mxu0 %v1188_v56 }
  0x59   :  { %1084 = vmatprep.subr.bf16.mxu1 %v1189_v57 }
  0x5b   :  { %1063 = vmatpush3.bf16.msra.mxu0 %v1190_v58 }
  0x5c   :  { %1085 = vmatpush3.bf16.msra.mxu1 %v1191_v59  ;;  %1064 = vmatprep.subr.bf16.mxu0 %v1192_v60  ;;  %v1307_v59 = vmov 0  }
  0x5d   :  { %1086 = vmatprep.subr.bf16.mxu1 %v1193_v61  ;;  %v1001_v61 = vld [vmem:[%s1363_s4] ss:$0 sm:$0xff] }
  0x5f   :  { %1065 = vmatpush3.bf16.msra.mxu0 %v1194_v62 }
  0x60   :  { %1087 = vmatpush3.bf16.msra.mxu1 %v1195_v63  ;;  %1066 = vmatprep.subr.bf16.mxu0 %v1196_v0 }
  0x61   :  { %1088 = vmatprep.subr.bf16.mxu1 %v1197_v1 }
  0x63   :  { %1067 = vmatpush3.bf16.msra.mxu0 %v1198_v2 }
  0x64   :  { %1089 = vmatpush3.bf16.msra.mxu1 %v1199_v3  ;;  %1068 = vmatprep.subr.bf16.mxu0 %v1200_v4 }
  0x65   :  { %1090 = vmatprep.subr.bf16.mxu1 %v1201_v5 }
  0x67   :  { %1069 = vmatpush3.bf16.msra.mxu0 %v1202_v6 }
  0x68   :  { %1091 = vmatpush3.bf16.msra.mxu1 %v1203_v7  ;;  %1107 = vmatprep.subr.bf16.mxu0 %v1305_v17 }
  0x6a   :  { %745 = vmatmul.mubr.bf16.vlgmr.msra.gmra.mxu0 %v933_v10 }
  0x6b   :  { %786 = vmatmul.mubr.bf16.vlgmr.msra.gmra.mxu1 %v935_v14  ;;  %1108 = vmatpush3.bf16.msra.mxu0 %v1204_v16 }
  0x6c   :  { %1109 = vmatprep.subr.bf16.mxu0 %v1305_v17  ;;  %1123 = vmatprep.mubr.msk.bf16.mxu0 %vm1306_vm0, %v1305_v17 }
  0x6f   :  { %1110 = vmatpush3.bf16.msra.mxu0 %v1205_v18 }
  0x70   :  { %1111 = vmatprep.subr.bf16.mxu0 %v1305_v17 }
  0x73   :  { %1112 = vmatpush3.bf16.msra.mxu0 %v1206_v19 }
  0x74   :  { %1113 = vmatprep.subr.bf16.mxu0 %v1305_v17 }
  0x77   :  { %1114 = vmatpush3.bf16.msra.mxu0 %v1207_v20 }
  0x78   :  { %1115 = vmatprep.subr.bf16.mxu0 %v1305_v17 }
  0x7b   :  { %1116 = vmatpush3.bf16.msra.mxu0 %v1208_v21 }
  0x7c   :  { %1117 = vmatprep.subr.bf16.mxu0 %v1305_v17 }
  0x7f   :  { %1118 = vmatpush3.bf16.msra.mxu0 %v1209_v22 }
  0x80   :  { %1119 = vmatprep.subr.bf16.mxu0 %v1305_v17 }
  0x83   :  { %1120 = vmatpush3.bf16.msra.mxu0 %v1210_v23 }
  0x84   :  { %1121 = vmatprep.subr.bf16.mxu0 %v1305_v17 }
  0x87   :  { %1122 = vmatpush3.bf16.msra.mxu0 %v1211_v24 }
 0x10a   :  { %v1026_v25 = vpop.f32.mrf.mxu0 }
 0x10b   :  { %v1048_v26 = vpop.f32.mrf.mxu1 }
 0x10c   :  { %v1027_v27 = vpop.f32.mrf.mxu0 }
 0x10d   :  { %v1049_v28 = vpop.f32.mrf.mxu1  ;;  %v1028_v32 = vadd.f32 %v1027_v27, %v1026_v25 }
 0x10e   :  { %v1029_v29 = vpop.f32.mrf.mxu0  ;;  %v1050_v38 = vadd.f32 %v1049_v28, %v1048_v26 }
 0x10f   :  { %v1051_v30 = vpop.f32.mrf.mxu1  ;;  %v665_v37 = vadd.f32 %v1028_v32, %v928_v33 }
 0x110   :  { %v1030_v31 = vpop.f32.mrf.mxu0 }
 0x111   :  { %v1031_v34 = vadd.f32 %v1030_v31, %v1029_v29  ;;  %v1052_v35 = vpop.f32.mrf.mxu1  ;;  %v706_v45 = vadd.f32 %v1050_v38, %v665_v37 }
 0x112   :  { %v1053_v46 = vadd.f32 %v1052_v35, %v1051_v30 }
 0x113   :  { %v668_v41 = vadd.f32 %v1031_v34, %v928_v33 }
 0x115   :  { %v709_v49 = vadd.f32 %v1053_v46, %v668_v41 }
 0x12a   :  { %v1070_v36 = vpop.f32.mrf.mxu0 }
 0x12b   :  { %v1092_v39 = vpop.f32.mrf.mxu1 }
 0x12c   :  { %v1071_v40 = vpop.f32.mrf.mxu0 }
 0x12d   :  { %v1072_v42 = vadd.f32 %v1071_v40, %v1070_v36  ;;  %v1093_v43 = vpop.f32.mrf.mxu1 }
 0x12e   :  { %v1073_v44 = vpop.f32.mrf.mxu0  ;;  %v1094_v53 = vadd.f32 %v1093_v43, %v1092_v39 }
 0x12f   :  { %v1095_v47 = vpop.f32.mrf.mxu1  ;;  %v747_v50 = vadd.f32 %v1072_v42, %v706_v45 }
 0x130   :  { %v1074_v48 = vpop.f32.mrf.mxu0 }
 0x131   :  { %v1075_v51 = vadd.f32 %v1074_v48, %v1073_v44  ;;  %v1096_v52 = vpop.f32.mrf.mxu1  ;;  %v788_v56 = vadd.f32 %v1094_v53, %v747_v50 }
 0x132   :  { %v1097_v55 = vadd.f32 %v1096_v52, %v1095_v47 }
 0x133   :  { %v750_v54 = vadd.f32 %v1075_v51, %v709_v49 }
 0x135   :  { %v791_v57 = vadd.f32 %v1097_v55, %v750_v54 }
 0x137   :  { %v794_v58 = vpack.c.bf16 %v791_v57, %v788_v56 }
 0x139   :  { %v795_v60 = vmax.bf16 %v1307_v59, %v794_v58 }
 0x13b   :  { %1124 = vmatmul.mubr.bf16.vlgmr.msra.gmra.mxu0 %v795_v60 }
 0x1fb   :  { %v901_v62 = vpop.f32.mrf.mxu0 }
 0x1fc   :  { %v902_v63 = vadd.f32 %v1001_v61, %v901_v62 }
 0x1fd   :  { %v1125_v0 = vpop.f32.mrf.mxu0 }
 0x1fe   :  { %908 = vst [vmem:[#allocation8] sm:$0xff] %v902_v63 }
 0x1ff   :  { %v904_v1 = vpop.f32.mrf.mxu0 }
 0x200   :  { %v905_v2 = vadd.f32 %v1001_v61, %v904_v1 }
 0x201   :  { %v1126_v3 = vpop.f32.mrf.mxu0 }
 0x202   :  { %909 = vst [vmem:[#allocation8 + $0x8] sm:$0xff] %v905_v2 }
 0x203   :  { %1283 = shalt.err (!%p1280_p5)
}
 0x204   :  { %s1309_s15 = smov 128   ;;  %s1310_s4 = smov 8  }
 0x205   :  { %921 = dma.vmem_to_hbm [thread:$0]  %s916_s13, 256, %s1364_s5, [#allocation4], %s1309_s15, %s1309_s15, %s1310_s4  }
 0x206   :  { %1296 = dma.done.wait [#allocation4], 256  }
 0x207   :  { %1297 = vsyncadd [#allocation4], 4294967040 }
 0x208   :  { %925 = vsyncpa [#allocation3], 1 }
 0x209   :  { %926 = vsyncpa [#allocation6], 1 }
 0x20a   :  { %927 = vsyncpa [#allocation4], 1 }

// kernel: tpu_custom_call.1
= control target key start
LH: loop header
LB: loop body
LE: loop exit
PB: predicated region body
PF: predicated region fallthrough
CT: control target
= control target key end

     0   :  { %10 = vsyncpa [#allocation3], 0  ;;  %s1359_s0 = inlined_call_operand.hbm [shape: bf16[16,1024], index: 0, kind: input, shape index: {}]   ;;  %s1360_s1 = inlined_call_operand.hbm [shape: bf16[1024,128], index: 1, kind: input, shape index: {}]   ;;  %s1361_s2 = inlined_call_operand.vmem [shape: f32[1,128], index: 2, kind: input, shape index: {}]   ;;  %s1362_s3 = inlined_call_operand.hbm [shape: bf16[128,128], index: 3, kind: input, shape index: {}]   ;;  %s1363_s4 = inlined_call_operand.vmem [shape: f32[1,128], index: 4, kind: input, shape index: {}]   ;;  %s1364_s5 = inlined_call_operand.hbm [shape: f32[16,128], index: 5, kind: output, shape index: {}]  }
   0x1   :  { %11 = vsyncpa [#allocation6], 0 }
   0x2   :  { %12 = vsyncpa [#allocation4], 0  ;;  %s1298_s18 = smov [#allocation5]  }
   0x3   :  { %s30_s19 = sshll.u32 %s1298_s18, 4  ;;  %s31_s19 = int_to_ptr.vmem [resolvable:$true] %s30_s19 }
   0x4   :  { %s1220_s20 = scalar_lea.vmem %s31_s19, 8192  ;;  %p1225_p1 = scmp.lt.s32.totalorder %s31_s19, %s31_s19 }
   0x5   :  { %p1221_p0 = scmp.ne.s32.totalorder %s31_s19, %s1220_s20  ;;  %p1226_p2 = scmp.lt.s32.totalorder %s1220_s20, %s1220_s20 }
   0x7   :  { %p1227_p3 = por %p1226_p2, %p1225_p1 }
   0x9   :  { %p1228_p4 = pnand %p1227_p3, %p1221_p0 }
   0xb   :  { %1231 = shalt.err (!%p1228_p4)
}
   0xc   :  { %s1299_s21 = smov 64   ;;  %s1300_s22 = smov 4  }
   0xd   :  { %36 = dma.hbm_to_vmem [thread:$0]  %s1360_s1, 8192, %s31_s19, [#allocation6], %s1299_s21, %s1299_s21, %s1300_s22  }
   0xe   :  { %s1301_s25 = smov [#allocation2]  }
   0xf   :  { %s18_s26 = sshll.u32 %s1301_s25, 4  ;;  %s19_s26 = int_to_ptr.vmem [resolvable:$true] %s18_s26 }
  0x10   :  { %s1240_s27 = scalar_lea.vmem %s19_s26, 1024  ;;  %p1245_p6 = scmp.lt.s32.totalorder %s19_s26, %s19_s26 }
  0x11   :  { %p1241_p5 = scmp.ne.s32.totalorder %s19_s26, %s1240_s27  ;;  %p1246_p7 = scmp.lt.s32.totalorder %s1240_s27, %s1240_s27 }
  0x13   :  { %p1247_p8 = por %p1246_p7, %p1245_p6 }
  0x15   :  { %p1248_p9 = pnand %p1247_p8, %p1241_p5 }
  0x17   :  { %1251 = shalt.err (!%p1248_p9)
}
  0x18   :  { %s1302_s28 = smov 512   ;;  %s1303_s29 = smov 32  }
  0x19   :  { %24 = dma.hbm_to_vmem [thread:$0]  %s1359_s0, 1024, %s19_s26, [#allocation3], %s1302_s28, %s1302_s28, %s1303_s29  }
  0x1a   :  { %s1304_s7 = smov [#allocation7]  }
  0x1b   :  { %s44_s8 = sshll.u32 %s1304_s7, 4  ;;  %s45_s8 = int_to_ptr.vmem [resolvable:$true] %s44_s8 }
  0x1c   :  { %s1260_s1 = scalar_lea.vmem %s45_s8, 1024  ;;  %p1265_p11 = scmp.lt.s32.totalorder %s45_s8, %s45_s8 }
  0x1d   :  { %p1261_p10 = scmp.ne.s32.totalorder %s45_s8, %s1260_s1  ;;  %p1266_p12 = scmp.lt.s32.totalorder %s1260_s1, %s1260_s1 }
  0x1f   :  { %p1267_p13 = por %p1266_p12, %p1265_p11 }
  0x21   :  { %p1268_p0 = pnand %p1267_p13, %p1261_p10 }
  0x23   :  { %1271 = shalt.err (!%p1268_p0)
}
  0x24   :  { %50 = dma.hbm_to_vmem [thread:$0]  %s1362_s3, 1024, %s45_s8, [#allocation6], %s1299_s21, %s1299_s21, %s1300_s22  }
  0x25   :  { %1292 = dma.done.wait [#allocation3], 1024  }
  0x26   :  { %1293 = vsyncadd [#allocation3], 4294966272 }
  0x27   :  { %1294 = dma.done.wait [#allocation6], 9216  }
  0x28   :  { %1295 = vsyncadd [#allocation6], 4294958080  ;;  %v1140_v0 = vld [vmem:[#allocation5 + $0x78] sm:$0xff]   ;;  %v1144_v4 = vld [vmem:[#allocation5 + $0x70] sm:$0xff]   ;;  %vm1306_vm0 = vmmov 0   ;;  %s1308_s12 = smov [#allocation8]  }
  0x29   :  { %v1141_v1 = vld [vmem:[#allocation5 + $0xf8] sm:$0xff]   ;;  %1010 = vmatprep.subr.bf16.mxu0 %v1140_v0  ;;  %v1145_v5 = vld [vmem:[#allocation5 + $0xf0] sm:$0xff]   ;;  %v1148_v8 = vld [vmem:[#allocation5 + $0x68] sm:$0xff]   ;;  %s915_s13 = sshll.u32 %s1308_s12, 4  ;;  %s916_s13 = int_to_ptr.vmem [resolvable:$true] %s915_s13 }
  0x2a   :  { %v1142_v2 = vld [vmem:[#allocation5 + $0x38] sm:$0xff]   ;;  %1032 = vmatprep.subr.bf16.mxu1 %v1141_v1  ;;  %v1146_v6 = vld [vmem:[#allocation5 + $0x30] sm:$0xff]   ;;  %v1149_v9 = vld [vmem:[#allocation5 + $0xe8] sm:$0xff]   ;;  %s1272_s14 = scalar_lea.vmem %s916_s13, 256  ;;  %p1277_p2 = scmp.lt.s32.totalorder %s916_s13, %s916_s13 }
  0x2b   :  { %v1143_v3 = vld [vmem:[#allocation5 + $0xb8] sm:$0xff]   ;;  %1011 = vmatpush3.bf16.msra.mxu0 %v1142_v2  ;;  %v1147_v7 = vld [vmem:[#allocation5 + $0xb0] sm:$0xff]   ;;  %v1150_v10 = vld [vmem:[#allocation5 + $0x28] sm:$0xff]   ;;  %p1273_p1 = scmp.ne.s32.totalorder %s916_s13, %s1272_s14  ;;  %p1278_p3 = scmp.lt.s32.totalorder %s1272_s14, %s1272_s14 }
  0x2c   :  { %1033 = vmatpush3.bf16.msra.mxu1 %v1143_v3  ;;  %1012 = vmatprep.subr.bf16.mxu0 %v1144_v4  ;;  %v1151_v11 = vld [vmem:[#allocation5 + $0xa8] sm:$0xff]   ;;  %v1152_v12 = vld [vmem:[#allocation5 + $0x60] sm:$0xff]   ;;  %v1156_v16 = vld [vmem:[#allocation5 + $0x58] sm:$0xff]  }
  0x2d   :  { %1034 = vmatprep.subr.bf16.mxu1 %v1145_v5  ;;  %v1153_v13 = vld [vmem:[#allocation5 + $0xe0] sm:$0xff]   ;;  %v1157_v17 = vld [vmem:[#allocation5 + $0xd8] sm:$0xff]   ;;  %v1160_v20 = vld [vmem:[#allocation5 + $0x50] sm:$0xff]   ;;  %p1279_p4 = por %p1278_p3, %p1277_p2 }
  0x2e   :  { %v1154_v14 = vld [vmem:[#allocation5 + $0x20] sm:$0xff]   ;;  %v1158_v18 = vld [vmem:[#allocation5 + $0x18] sm:$0xff]   ;;  %v1161_v21 = vld [vmem:[#allocation5 + $0xd0] sm:$0xff]  }
  0x2f   :  { %1013 = vmatpush3.bf16.msra.mxu0 %v1146_v6  ;;  %v1155_v15 = vld [vmem:[#allocation5 + $0xa0] sm:$0xff]   ;;  %v1159_v19 = vld [vmem:[#allocation5 + $0x98] sm:$0xff]   ;;  %v1162_v22 = vld [vmem:[#allocation5 + $0x10] sm:$0xff]   ;;  %p1280_p5 = pnand %p1279_p4, %p1273_p1 }
  0x30   :  { %1035 = vmatpush3.bf16.msra.mxu1 %v1147_v7  ;;  %1014 = vmatprep.subr.bf16.mxu0 %v1148_v8  ;;  %v1163_v23 = vld [vmem:[#allocation5 + $0x90] sm:$0xff]   ;;  %v1164_v24 = vld [vmem:[#allocation5 + $0x48] sm:$0xff]   ;;  %v1168_v28 = vld [vmem:[#allocation5 + $0x40] sm:$0xff]  }
  0x31   :  { %1036 = vmatprep.subr.bf16.mxu1 %v1149_v9  ;;  %v1165_v25 = vld [vmem:[#allocation5 + $0xc8] sm:$0xff]   ;;  %v1169_v29 = vld [vmem:[#allocation5 + $0xc0] sm:$0xff]   ;;  %v1172_v40 = vld [vmem:[#allocation5 + $0x178] sm:$0xff]  }
  0x32   :  { %v1166_v26 = vld [vmem:[#allocation5 + $0x8] sm:$0xff]   ;;  %v1170_v30 = vld [vmem:[#allocation5] sm:$0xff]   ;;  %v1173_v41 = vld [vmem:[#allocation5 + $0x1f8] sm:$0xff]  }
  0x33   :  { %1015 = vmatpush3.bf16.msra.mxu0 %v1150_v10  ;;  %v1167_v27 = vld [vmem:[#allocation5 + $0x88] sm:$0xff]   ;;  %v1171_v31 = vld [vmem:[#allocation5 + $0x80] sm:$0xff]   ;;  %v1174_v42 = vld [vmem:[#allocation5 + $0x138] sm:$0xff]  }
  0x34   :  { %1037 = vmatpush3.bf16.msra.mxu1 %v1151_v11  ;;  %1016 = vmatprep.subr.bf16.mxu0 %v1152_v12  ;;  %v63_v32 = vld [vmem:[#allocation2] sm:$0xff]  ;;  %v64_v34 = vld [vmem:[#allocation2 + $0x8] sm:$0xff]  ;;  %v1175_v43 = vld [vmem:[#allocation5 + $0x1b8] sm:$0xff]  }
  0x35   :  { %1038 = vmatprep.subr.bf16.mxu1 %v1153_v13  ;;  %v67_v33 = vld [vmem:[#allocation2 + $0x20] sm:$0xff]  ;;  %v68_v37 = vld [vmem:[#allocation2 + $0x28] sm:$0xff]  ;;  %v1176_v44 = vld [vmem:[#allocation5 + $0x170] sm:$0xff]  }
  0x36   :  { %v929_v35 = vcombine.low %v63_v32, %v67_v33  ;;  %v930_v36 = vcombine.high %v63_v32, %v67_v33  ;;  %v931_v38 = vcombine.low %v64_v34, %v68_v37  ;;  %v932_v39 = vcombine.high %v64_v34, %v68_v37  ;;  %v1177_v45 = vld [vmem:[#allocation5 + $0x1f0] sm:$0xff]   ;;  %v1180_v48 = vld [vmem:[#allocation5 + $0x168] sm:$0xff]   ;;  %v1184_v52 = vld [vmem:[#allocation5 + $0x160] sm:$0xff]  }
  0x37   :  { %1017 = vmatpush3.bf16.msra.mxu0 %v1154_v14  ;;  %v1178_v46 = vld [vmem:[#allocation5 + $0x130] sm:$0xff]   ;;  %v1181_v49 = vld [vmem:[#allocation5 + $0x1e8] sm:$0xff]   ;;  %v1185_v53 = vld [vmem:[#allocation5 + $0x1e0] sm:$0xff]  }
  0x38   :  { %1039 = vmatpush3.bf16.msra.mxu1 %v1155_v15  ;;  %1018 = vmatprep.subr.bf16.mxu0 %v1156_v16  ;;  %v1179_v47 = vld [vmem:[#allocation5 + $0x1b0] sm:$0xff]   ;;  %v1182_v50 = vld [vmem:[#allocation5 + $0x128] sm:$0xff]   ;;  %v1186_v54 = vld [vmem:[#allocation5 + $0x120] sm:$0xff]  }
  0x39   :  { %1040 = vmatprep.subr.bf16.mxu1 %v1157_v17  ;;  %662 = vmatprep.mubr.bf16.mxu0 %v930_v36  ;;  %v1183_v51 = vld [vmem:[#allocation5 + $0x1a8] sm:$0xff]   ;;  %v1187_v55 = vld [vmem:[#allocation5 + $0x1a0] sm:$0xff]   ;;  %v1188_v56 = vld [vmem:[#allocation5 + $0x158] sm:$0xff]   ;;  %v1305_v17 = vmov 0.0  }
  0x3a   :  { %703 = vmatprep.mubr.bf16.mxu1 %v932_v39  ;;  %v1189_v57 = vld [vmem:[#allocation5 + $0x1d8] sm:$0xff]   ;;  %v1192_v60 = vld [vmem:[#allocation5 + $0x150] sm:$0xff]   ;;  %v1196_v0 = vld [vmem:[#allocation5 + $0x148] sm:$0xff]  }
  0x3b   :  { %1019 = vmatpush3.bf16.msra.mxu0 %v1158_v18  ;;  %v1190_v58 = vld [vmem:[#allocation5 + $0x118] sm:$0xff]   ;;  %v1193_v61 = vld [vmem:[#allocation5 + $0x1d0] sm:$0xff]   ;;  %v1197_v1 = vld [vmem:[#allocation5 + $0x1c8] sm:$0xff]  }
  0x3c   :  { %1041 = vmatpush3.bf16.msra.mxu1 %v1159_v19  ;;  %1020 = vmatprep.subr.bf16.mxu0 %v1160_v20  ;;  %v1191_v59 = vld [vmem:[#allocation5 + $0x198] sm:$0xff]   ;;  %v1194_v62 = vld [vmem:[#allocation5 + $0x110] sm:$0xff]   ;;  %v1198_v2 = vld [vmem:[#allocation5 + $0x108] sm:$0xff]  }
  0x3d   :  { %1042 = vmatprep.subr.bf16.mxu1 %v1161_v21  ;;  %v1195_v63 = vld [vmem:[#allocation5 + $0x190] sm:$0xff]   ;;  %v1199_v3 = vld [vmem:[#allocation5 + $0x188] sm:$0xff]   ;;  %v1200_v4 = vld [vmem:[#allocation5 + $0x140] sm:$0xff]  }
  0x3e   :  { %v1201_v5 = vld [vmem:[#allocation5 + $0x1c0] sm:$0xff]   ;;  %v65_v8 = vld [vmem:[#allocation2 + $0x10] sm:$0xff]  ;;  %v66_v12 = vld [vmem:[#allocation2 + $0x18] sm:$0xff] }
  0x3f   :  { %1021 = vmatpush3.bf16.msra.mxu0 %v1162_v22  ;;  %v1202_v6 = vld [vmem:[#allocation5 + $0x100] sm:$0xff]   ;;  %v69_v9 = vld [vmem:[#allocation2 + $0x30] sm:$0xff]  ;;  %v70_v13 = vld [vmem:[#allocation2 + $0x38] sm:$0xff] }
  0x40   :  { %1043 = vmatpush3.bf16.msra.mxu1 %v1163_v23  ;;  %1022 = vmatprep.subr.bf16.mxu0 %v1164_v24  ;;  %v1203_v7 = vld [vmem:[#allocation5 + $0x180] sm:$0xff]   ;;  %v933_v10 = vcombine.low %v65_v8, %v69_v9  ;;  %v934_v11 = vcombine.high %v65_v8, %v69_v9  ;;  %v935_v14 = vcombine.low %v66_v12, %v70_v13  ;;  %v1204_v16 = vld [vmem:[#allocation7 + $0x38] sm:$0xff]   ;;  %v1205_v18 = vld [vmem:[#allocation7 + $0x30] sm:$0xff]  }
  0x41   :  { %1044 = vmatprep.subr.bf16.mxu1 %v1165_v25  ;;  %v936_v15 = vcombine.high %v66_v12, %v70_v13  ;;  %v1206_v19 = vld [vmem:[#allocation7 + $0x28] sm:$0xff]   ;;  %v1207_v20 = vld [vmem:[#allocation7 + $0x20] sm:$0xff]   ;;  %v1208_v21 = vld [vmem:[#allocation7 + $0x18] sm:$0xff]  }
  0x42   :  { %v1209_v22 = vld [vmem:[#allocation7 + $0x10] sm:$0xff]   ;;  %v1210_v23 = vld [vmem:[#allocation7 + $0x8] sm:$0xff]   ;;  %v1211_v24 = vld [vmem:[#allocation7] sm:$0xff]  }
  0x43   :  { %1023 = vmatpush3.bf16.msra.mxu0 %v1166_v26  ;;  %v928_v33 = vld [vmem:[%s1361_s2] ss:$0 sm:$0xff] }
  0x44   :  { %1045 = vmatpush3.bf16.msra.mxu1 %v1167_v27  ;;  %1024 = vmatprep.subr.bf16.mxu0 %v1168_v28 }
  0x45   :  { %1046 = vmatprep.subr.bf16.mxu1 %v1169_v29 }
  0x47   :  { %1025 = vmatpush3.bf16.msra.mxu0 %v1170_v30 }
  0x48   :  { %1047 = vmatpush3.bf16.msra.mxu1 %v1171_v31  ;;  %1054 = vmatprep.subr.bf16.mxu0 %v1172_v40 }
  0x49   :  { %1076 = vmatprep.subr.bf16.mxu1 %v1173_v41 }
  0x4a   :  { %663 = vmatmul.mubr.bf16.vlgmr.msra.gmra.mxu0 %v929_v35 }
  0x4b   :  { %704 = vmatmul.mubr.bf16.vlgmr.msra.gmra.mxu1 %v931_v38  ;;  %1055 = vmatpush3.bf16.msra.mxu0 %v1174_v42 }
  0x4c   :  { %1077 = vmatpush3.bf16.msra.mxu1 %v1175_v43  ;;  %1056 = vmatprep.subr.bf16.mxu0 %v1176_v44 }
  0x4d   :  { %1078 = vmatprep.subr.bf16.mxu1 %v1177_v45  ;;  %744 = vmatprep.mubr.bf16.mxu0 %v934_v11 }
  0x4e   :  { %785 = vmatprep.mubr.bf16.mxu1 %v936_v15 }
  0x4f   :  { %1057 = vmatpush3.bf16.msra.mxu0 %v1178_v46 }
  0x50   :  { %1079 = vmatpush3.bf16.msra.mxu1 %v1179_v47  ;;  %1058 = vmatprep.subr.bf16.mxu0 %v1180_v48 }
  0x51   :  { %1080 = vmatprep.subr.bf16.mxu1 %v1181_v49 }
  0x53   :  { %1059 = vmatpush3.bf16.msra.mxu0 %v1182_v50 }
  0x54   :  { %1081 = vmatpush3.bf16.msra.mxu1 %v1183_v51  ;;  %1060 = vmatprep.subr.bf16.mxu0 %v1184_v52 }
  0x55   :  { %1082 = vmatprep.subr.bf16.mxu1 %v1185_v53 }
  0x57   :  { %1061 = vmatpush3.bf16.msra.mxu0 %v1186_v54 }
  0x58   :  { %1083 = vmatpush3.bf16.msra.mxu1 %v1187_v55  ;;  %1062 = vmatprep.subr.bf16.mxu0 %v1188_v56 }
  0x59   :  { %1084 = vmatprep.subr.bf16.mxu1 %v1189_v57 }
  0x5b   :  { %1063 = vmatpush3.bf16.msra.mxu0 %v1190_v58 }
  0x5c   :  { %1085 = vmatpush3.bf16.msra.mxu1 %v1191_v59  ;;  %1064 = vmatprep.subr.bf16.mxu0 %v1192_v60  ;;  %v1307_v59 = vmov 0  }
  0x5d   :  { %1086 = vmatprep.subr.bf16.mxu1 %v1193_v61  ;;  %v1001_v61 = vld [vmem:[%s1363_s4] ss:$0 sm:$0xff] }
  0x5f   :  { %1065 = vmatpush3.bf16.msra.mxu0 %v1194_v62 }
  0x60   :  { %1087 = vmatpush3.bf16.msra.mxu1 %v1195_v63  ;;  %1066 = vmatprep.subr.bf16.mxu0 %v1196_v0 }
  0x61   :  { %1088 = vmatprep.subr.bf16.mxu1 %v1197_v1 }
  0x63   :  { %1067 = vmatpush3.bf16.msra.mxu0 %v1198_v2 }
  0x64   :  { %1089 = vmatpush3.bf16.msra.mxu1 %v1199_v3  ;;  %1068 = vmatprep.subr.bf16.mxu0 %v1200_v4 }
  0x65   :  { %1090 = vmatprep.subr.bf16.mxu1 %v1201_v5 }
  0x67   :  { %1069 = vmatpush3.bf16.msra.mxu0 %v1202_v6 }
  0x68   :  { %1091 = vmatpush3.bf16.msra.mxu1 %v1203_v7  ;;  %1107 = vmatprep.subr.bf16.mxu0 %v1305_v17 }
  0x6a   :  { %745 = vmatmul.mubr.bf16.vlgmr.msra.gmra.mxu0 %v933_v10 }
  0x6b   :  { %786 = vmatmul.mubr.bf16.vlgmr.msra.gmra.mxu1 %v935_v14  ;;  %1108 = vmatpush3.bf16.msra.mxu0 %v1204_v16 }
  0x6c   :  { %1109 = vmatprep.subr.bf16.mxu0 %v1305_v17  ;;  %1123 = vmatprep.mubr.msk.bf16.mxu0 %vm1306_vm0, %v1305_v17 }
  0x6f   :  { %1110 = vmatpush3.bf16.msra.mxu0 %v1205_v18 }
  0x70   :  { %1111 = vmatprep.subr.bf16.mxu0 %v1305_v17 }
  0x73   :  { %1112 = vmatpush3.bf16.msra.mxu0 %v1206_v19 }
  0x74   :  { %1113 = vmatprep.subr.bf16.mxu0 %v1305_v17 }
  0x77   :  { %1114 = vmatpush3.bf16.msra.mxu0 %v1207_v20 }
  0x78   :  { %1115 = vmatprep.subr.bf16.mxu0 %v1305_v17 }
  0x7b   :  { %1116 = vmatpush3.bf16.msra.mxu0 %v1208_v21 }
  0x7c   :  { %1117 = vmatprep.subr.bf16.mxu0 %v1305_v17 }
  0x7f   :  { %1118 = vmatpush3.bf16.msra.mxu0 %v1209_v22 }
  0x80   :  { %1119 = vmatprep.subr.bf16.mxu0 %v1305_v17 }
  0x83   :  { %1120 = vmatpush3.bf16.msra.mxu0 %v1210_v23 }
  0x84   :  { %1121 = vmatprep.subr.bf16.mxu0 %v1305_v17 }
  0x87   :  { %1122 = vmatpush3.bf16.msra.mxu0 %v1211_v24 }
 0x10a   :  { %v1026_v25 = vpop.f32.mrf.mxu0 }
 0x10b   :  { %v1048_v26 = vpop.f32.mrf.mxu1 }
 0x10c   :  { %v1027_v27 = vpop.f32.mrf.mxu0 }
 0x10d   :  { %v1049_v28 = vpop.f32.mrf.mxu1  ;;  %v1028_v32 = vadd.f32 %v1027_v27, %v1026_v25 }
 0x10e   :  { %v1029_v29 = vpop.f32.mrf.mxu0  ;;  %v1050_v38 = vadd.f32 %v1049_v28, %v1048_v26 }
 0x10f   :  { %v1051_v30 = vpop.f32.mrf.mxu1  ;;  %v665_v37 = vadd.f32 %v1028_v32, %v928_v33 }
 0x110   :  { %v1030_v31 = vpop.f32.mrf.mxu0 }
 0x111   :  { %v1031_v34 = vadd.f32 %v1030_v31, %v1029_v29  ;;  %v1052_v35 = vpop.f32.mrf.mxu1  ;;  %v706_v45 = vadd.f32 %v1050_v38, %v665_v37 }
 0x112   :  { %v1053_v46 = vadd.f32 %v1052_v35, %v1051_v30 }
 0x113   :  { %v668_v41 = vadd.f32 %v1031_v34, %v928_v33 }
 0x115   :  { %v709_v49 = vadd.f32 %v1053_v46, %v668_v41 }
 0x12a   :  { %v1070_v36 = vpop.f32.mrf.mxu0 }
 0x12b   :  { %v1092_v39 = vpop.f32.mrf.mxu1 }
 0x12c   :  { %v1071_v40 = vpop.f32.mrf.mxu0 }
 0x12d   :  { %v1072_v42 = vadd.f32 %v1071_v40, %v1070_v36  ;;  %v1093_v43 = vpop.f32.mrf.mxu1 }
 0x12e   :  { %v1073_v44 = vpop.f32.mrf.mxu0  ;;  %v1094_v53 = vadd.f32 %v1093_v43, %v1092_v39 }
 0x12f   :  { %v1095_v47 = vpop.f32.mrf.mxu1  ;;  %v747_v50 = vadd.f32 %v1072_v42, %v706_v45 }
 0x130   :  { %v1074_v48 = vpop.f32.mrf.mxu0 }
 0x131   :  { %v1075_v51 = vadd.f32 %v1074_v48, %v1073_v44  ;;  %v1096_v52 = vpop.f32.mrf.mxu1  ;;  %v788_v56 = vadd.f32 %v1094_v53, %v747_v50 }
 0x132   :  { %v1097_v55 = vadd.f32 %v1096_v52, %v1095_v47 }
 0x133   :  { %v750_v54 = vadd.f32 %v1075_v51, %v709_v49 }
 0x135   :  { %v791_v57 = vadd.f32 %v1097_v55, %v750_v54 }
 0x137   :  { %v794_v58 = vpack.c.bf16 %v791_v57, %v788_v56 }
 0x139   :  { %v795_v60 = vmax.bf16 %v1307_v59, %v794_v58 }
 0x13b   :  { %1124 = vmatmul.mubr.bf16.vlgmr.msra.gmra.mxu0 %v795_v60 }
 0x1fb   :  { %v901_v62 = vpop.f32.mrf.mxu0 }
 0x1fc   :  { %v902_v63 = vadd.f32 %v1001_v61, %v901_v62 }
 0x1fd   :  { %v1125_v0 = vpop.f32.mrf.mxu0 }
 0x1fe   :  { %908 = vst [vmem:[#allocation8] sm:$0xff] %v902_v63 }
 0x1ff   :  { %v904_v1 = vpop.f32.mrf.mxu0 }
 0x200   :  { %v905_v2 = vadd.f32 %v1001_v61, %v904_v1 }
 0x201   :  { %v1126_v3 = vpop.f32.mrf.mxu0 }
 0x202   :  { %909 = vst [vmem:[#allocation8 + $0x8] sm:$0xff] %v905_v2 }
 0x203   :  { %1283 = shalt.err (!%p1280_p5)
}
 0x204   :  { %s1309_s15 = smov 128   ;;  %s1310_s4 = smov 8  }
 0x205   :  { %921 = dma.vmem_to_hbm [thread:$0]  %s916_s13, 256, %s1364_s5, [#allocation4], %s1309_s15, %s1309_s15, %s1310_s4  }
 0x206   :  { %1296 = dma.done.wait [#allocation4], 256  }
 0x207   :  { %1297 = vsyncadd [#allocation4], 4294967040 }
 0x208   :  { %925 = vsyncpa [#allocation3], 1 }
 0x209   :  { %926 = vsyncpa [#allocation6], 1 }
 0x20a   :  { %927 = vsyncpa [#allocation4], 1 }

</bundles_post_ra>
